<compile_context>
chip_gen: v7x
topology: tpu7x:2x2x1
jax: 0.10.0
libtpu: 0.0.40
codegen_flags: <defaults>
</compile_context>

<pallas_src>
import math
import functools

import jax
import jax.numpy as jnp
from jax.experimental import pallas as pl
from jax.experimental.pallas import tpu as pltpu


def _adapter_kernel(x_ref, wd_ref, bd_ref, wu_ref, bu_ref, *rest,
                    add_residual, separate_residual):
    # x_ref:  (TM, d_model)         streamed token tile
    # wd_ref: (d_model, bottleneck) resident weight
    # bd_ref: (1, bottleneck)       f32 bias
    # wu_ref: (bottleneck, d_model) resident weight (scale pre-folded)
    # bu_ref: (1, d_model)          f32 bias (scale pre-folded)
    # rest:   ([res_ref], o_ref)
    if separate_residual:
        res_ref, o_ref = rest
    else:
        (o_ref,) = rest

    x = x_ref[...]  # native dtype (f32 or bf16) straight into the MXU

    # down = relu(x @ W_down + b_down), f32 accumulation on the MXU.
    down = jnp.dot(x, wd_ref[...], preferred_element_type=jnp.float32)
    down = jnp.maximum(down + bd_ref[...], 0.0)
    # dropout p=0.0 (eval mode) -> identity.

    # up = down @ (W_up * scale) + (b_up * scale); scale folded in the wrapper.
    up = jnp.dot(down.astype(wu_ref.dtype), wu_ref[...],
                 preferred_element_type=jnp.float32)
    up = up + bu_ref[...]

    if add_residual:
        res = res_ref[...] if separate_residual else x
        up = up + res.astype(jnp.float32)

    o_ref[...] = up.astype(o_ref.dtype)


def _round_up(n, m):
    return ((n + m - 1) // m) * m


def _vmem_capacity_bytes():
    try:
        info = pltpu.get_tpu_info()
        return int(getattr(info, "vmem_capacity_bytes", 64 * 1024 * 1024))
    except Exception:
        return 64 * 1024 * 1024  # conservative (v7x per-TC)


def _pick_tile_m(n_rows, d_model, bottleneck, stream_itemsize, n_streams,
                 weight_bytes):
    """Largest row tile that fits ~45% of VMEM (weights double-buffered by default)."""
    budget = int(0.45 * _vmem_capacity_bytes()) - 2 * weight_bytes
    budget = max(budget, 1 << 20)
    # Streamed x/out/(res) tiles are double-buffered; add f32 intermediates (down, up).
    per_row = 2 * n_streams * d_model * stream_itemsize + 4 * (bottleneck + 2 * d_model)
    tile = budget // max(per_row, 1)
    return int(max(8, min(tile, 512)))


def adapter_forward(x, w_down, b_down, w_up, b_up, *, scale=0.1,
                    residual=None, add_residual=True, tile_m=None,
                    out_dtype=None):
    """Fused Adapter forward: relu(x @ W_down + b_down) @ (W_up*s) + b_up*s [+ residual]."""
    d_model = x.shape[-1]
    bottleneck = w_down.shape[-1]
    orig_shape = x.shape
    out_dtype = x.dtype if out_dtype is None else out_dtype

    # Fold the adapter scale into the up-projection parameters once (wrapper-side).
    scale = float(scale)
    w_up_s = (w_up * scale).astype(w_up.dtype)
    b_up_s = (b_up.astype(jnp.float32) * scale).reshape(1, d_model)
    b_down2 = b_down.astype(jnp.float32).reshape(1, bottleneck)

    x2 = x.reshape(-1, d_model)
    n_rows = x2.shape[0]

    separate_residual = bool(add_residual) and (residual is not None)
    res2 = residual.reshape(-1, d_model) if separate_residual else None
    n_streams = 2 + (1 if separate_residual else 0)  # x, out (+ residual)

    stream_itemsize = max(x2.dtype.itemsize, jnp.dtype(out_dtype).itemsize)
    weight_bytes = (w_down.size * w_down.dtype.itemsize
                    + w_up_s.size * w_up_s.dtype.itemsize
                    + b_down2.size * 4 + b_up_s.size * 4)

    if tile_m is None:
        tile_m = _pick_tile_m(n_rows, d_model, bottleneck, stream_itemsize,
                              n_streams, weight_bytes)
    tile_m = max(8, (int(tile_m) // 8) * 8)
    tile_m = min(tile_m, _round_up(n_rows, 8))

    # Pad rows to a multiple of tile_m (no divisibility restriction on callers).
    n_pad = _round_up(n_rows, tile_m)
    if n_pad != n_rows:
        pad = ((0, n_pad - n_rows), (0, 0))
        x2 = jnp.pad(x2, pad)
        if separate_residual:
            res2 = jnp.pad(res2, pad)

    grid = (n_pad // tile_m,)

    in_specs = [
        pl.BlockSpec((tile_m, d_model), lambda i: (i, 0)),       # x tile (streamed)
        pl.BlockSpec((d_model, bottleneck), lambda i: (0, 0)),   # W_down (resident)
        pl.BlockSpec((1, bottleneck), lambda i: (0, 0)),         # b_down
        pl.BlockSpec((bottleneck, d_model), lambda i: (0, 0)),   # W_up * scale (resident)
        pl.BlockSpec((1, d_model), lambda i: (0, 0)),            # b_up * scale
    ]
    args = [x2, w_down, b_down2, w_up_s, b_up_s]
    if separate_residual:
        in_specs.append(pl.BlockSpec((tile_m, d_model), lambda i: (i, 0)))
        args.append(res2)

    # VMEM budget: streamed tiles double-buffered + resident weights + f32 intermediates.
    est_vmem = (2 * n_streams * tile_m * d_model * stream_itemsize
                + 2 * weight_bytes
                + 4 * tile_m * (bottleneck + 2 * d_model))
    vmem_limit = min(64 * 1024 * 1024,
                     max(32 * 1024 * 1024, int(1.5 * est_vmem)))

    kernel = functools.partial(_adapter_kernel,
                               add_residual=bool(add_residual),
                               separate_residual=separate_residual)

    out2 = pl.pallas_call(
        kernel,
        out_shape=jax.ShapeDtypeStruct((n_pad, d_model), out_dtype),
        grid_spec=pltpu.PrefetchScalarGridSpec(
            num_scalar_prefetch=0,
            grid=grid,
            in_specs=in_specs,
            out_specs=pl.BlockSpec((tile_m, d_model), lambda i: (i, 0)),
        ),
        compiler_params=pltpu.CompilerParams(
            dimension_semantics=("parallel",),
            vmem_limit_bytes=vmem_limit),
    )(*args)

    if n_pad != n_rows:
        out2 = out2[:n_rows]
    return out2.reshape(orig_shape)


def _reference(x, w_down, b_down, w_up, b_up, scale, residual=None, add_residual=True):
    residual = x if residual is None else residual
    down = jnp.maximum(x @ w_down + b_down, 0.0)
    up = (down @ w_up + b_up) * scale
    return up + residual if add_residual else up


if __name__ == "__main__":
    # Small shapes consistent with the module's forward: (batch, seq, d_model).
    # d_model kept a multiple of 128 so stores are lane-dense.
    batch, seq, d_model, bottleneck = 2, 8, 128, 64
    scale = 0.1  # adapter_scalar='0.1'

    key = jax.random.PRNGKey(0)
    kx, kd, ku = jax.random.split(key, 3)

    x = jax.random.normal(kx, (batch, seq, d_model), dtype=jnp.float32)

    # Parameter init (deterministic, in-script).
    # down_proj: kaiming_uniform(a=sqrt(5)) over PyTorch weight (bottleneck, d_model)
    #   => bound = 1/sqrt(fan_in) = 1/sqrt(d_model); stored here transposed.
    bound = 1.0 / math.sqrt(d_model)
    w_down = jax.random.uniform(kd, (d_model, bottleneck),
                                minval=-bound, maxval=bound, dtype=jnp.float32)
    b_down = jnp.zeros((bottleneck,), dtype=jnp.float32)
    # NOTE: faithful 'lora' init zeros up_proj (output == residual). Use small random
    # up_proj weights instead so the fused matmul path is actually exercised.
    w_up = 0.02 * jax.random.normal(ku, (bottleneck, d_model), dtype=jnp.float32)
    b_up = jnp.zeros((d_model,), dtype=jnp.float32)

    # 1) f32 path, residual = x (residual reused in-kernel; no second HBM stream).
    out = jax.block_until_ready(
        adapter_forward(x, w_down, b_down, w_up, b_up, scale=scale))
    ref = _reference(x, w_down, b_down, w_up, b_up, scale)
    assert out.shape == x.shape
    assert jnp.allclose(out, ref, atol=1e-5, rtol=1e-5), "f32 mismatch vs reference"

    # 2) add_residual=False path (no residual DMA, no add of a zeros tensor).
    out_nr = jax.block_until_ready(
        adapter_forward(x, w_down, b_down, w_up, b_up, scale=scale,
                        add_residual=False))
    ref_nr = _reference(x, w_down, b_down, w_up, b_up, scale, add_residual=False)
    assert jnp.allclose(out_nr, ref_nr, atol=1e-5, rtol=1e-5), "no-residual mismatch"

    # 3) bf16 path: native-dtype operands into the MXU with f32 accumulation.
    xb = x.astype(jnp.bfloat16)
    wdb = w_down.astype(jnp.bfloat16)
    wub = w_up.astype(jnp.bfloat16)
    out_bf16 = jax.block_until_ready(
        adapter_forward(xb, wdb, b_down, wub, b_up, scale=scale))
    ref_bf16 = _reference(xb.astype(jnp.float32), wdb.astype(jnp.float32), b_down,
                          wub.astype(jnp.float32), b_up, scale)
    assert out_bf16.dtype == jnp.bfloat16
    assert jnp.allclose(out_bf16.astype(jnp.float32), ref_bf16,
                        atol=5e-2, rtol=5e-2), "bf16 mismatch vs reference"

    print("KERNEL_OK")
</pallas_src>

<mosaic_0001>
module attributes {stable_mosaic.version = 11 : i64} {
  func.func @_adapter_kernel(%arg0: i32, %arg1: memref<16x128xf32, #tpu.memory_space<vmem>>, %arg2: memref<128x64xf32, #tpu.memory_space<vmem>>, %arg3: memref<1x64xf32, #tpu.memory_space<vmem>>, %arg4: memref<64x128xf32, #tpu.memory_space<vmem>>, %arg5: memref<1x128xf32, #tpu.memory_space<vmem>>, %arg6: memref<16x128xf32, #tpu.memory_space<vmem>>) attributes {dimension_semantics = [#tpu.dimension_semantics<parallel>], iteration_bounds = array<i64: 1>, scalar_prefetch = 0 : i64, scratch_operands = 0 : i64, tpu.core_type = #tpu.core_type<tc>, window_params = [{transform_indices = @transform_0, window_bounds = array<i64: 16, 128>}, {pipeline_mode = #tpu.pipeline_mode<synchronous>, transform_indices = @transform_1, window_bounds = array<i64: 128, 64>}, {pipeline_mode = #tpu.pipeline_mode<synchronous>, transform_indices = @transform_2, window_bounds = array<i64: 1, 64>}, {pipeline_mode = #tpu.pipeline_mode<synchronous>, transform_indices = @transform_3, window_bounds = array<i64: 64, 128>}, {pipeline_mode = #tpu.pipeline_mode<synchronous>, transform_indices = @transform_4, window_bounds = array<i64: 1, 128>}, {transform_indices = @transform_5, window_bounds = array<i64: 16, 128>}]} {
    %c0 = arith.constant 0 : index
    %c0_0 = arith.constant 0 : index
    %0 = vector.load %arg1[%c0, %c0_0] : memref<16x128xf32, #tpu.memory_space<vmem>>, vector<16x128xf32>
    %c0_1 = arith.constant 0 : index
    %c0_2 = arith.constant 0 : index
    %1 = vector.load %arg2[%c0_1, %c0_2] : memref<128x64xf32, #tpu.memory_space<vmem>>, vector<128x64xf32>
    %cst = arith.constant dense<0.000000e+00> : vector<16x64xf32>
    %2 = tpu.matmul %0, %1, %cst {dimension_numbers = #tpu.dot_dimension_numbers<[1], [0], [0], [1], [0, 0, 1, 1], [], []>} : vector<16x128xf32>, vector<128x64xf32>, vector<16x64xf32> -> vector<16x64xf32>
    %c0_3 = arith.constant 0 : index
    %c0_4 = arith.constant 0 : index
    %3 = vector.load %arg3[%c0_3, %c0_4] : memref<1x64xf32, #tpu.memory_space<vmem>>, vector<1x64xf32>
    %4 = vector.broadcast %3 : vector<1x64xf32> to vector<16x64xf32>
    %5 = arith.addf %2, %4 : vector<16x64xf32>
    %cst_5 = arith.constant 0.000000e+00 : f32
    %6 = vector.broadcast %cst_5 : f32 to vector<16x64xf32>
    %7 = arith.maximumf %5, %6 : vector<16x64xf32>
    %c0_6 = arith.constant 0 : index
    %c0_7 = arith.constant 0 : index
    %8 = vector.load %arg4[%c0_6, %c0_7] : memref<64x128xf32, #tpu.memory_space<vmem>>, vector<64x128xf32>
    %cst_8 = arith.constant dense<0.000000e+00> : vector<16x128xf32>
    %9 = tpu.matmul %7, %8, %cst_8 {dimension_numbers = #tpu.dot_dimension_numbers<[1], [0], [0], [1], [0, 0, 1, 1], [], []>} : vector<16x64xf32>, vector<64x128xf32>, vector<16x128xf32> -> vector<16x128xf32>
    %c0_9 = arith.constant 0 : index
    %c0_10 = arith.constant 0 : index
    %10 = vector.load %arg5[%c0_9, %c0_10] : memref<1x128xf32, #tpu.memory_space<vmem>>, vector<1x128xf32>
    %11 = vector.broadcast %10 : vector<1x128xf32> to vector<16x128xf32>
    %12 = arith.addf %9, %11 : vector<16x128xf32>
    %13 = arith.addf %12, %0 : vector<16x128xf32>
    %c0_11 = arith.constant 0 : index
    %c0_12 = arith.constant 0 : index
    %14 = vector.load %arg6[%c0_11, %c0_12] : memref<16x128xf32, #tpu.memory_space<vmem>>, vector<16x128xf32>
    tpu.vector_store %arg6[%c0_11, %c0_12], %13 {strides = array<i32>} : memref<16x128xf32, #tpu.memory_space<vmem>>, vector<16x128xf32>,
    return
  }
  func.func @transform_0(%arg0: i32) -> (i32, i32) {
    %c0_i32 = arith.constant 0 : i32
    %c0_i32_0 = arith.constant 0 : i32
    return %arg0, %c0_i32 : i32, i32
  }
  func.func @transform_1(%arg0: i32) -> (i32, i32) {
    %c0_i32 = arith.constant 0 : i32
    %c0_i32_0 = arith.constant 0 : i32
    %c0_i32_1 = arith.constant 0 : i32
    return %c0_i32, %c0_i32_0 : i32, i32
  }
  func.func @transform_2(%arg0: i32) -> (i32, i32) {
    %c0_i32 = arith.constant 0 : i32
    %c0_i32_0 = arith.constant 0 : i32
    %c0_i32_1 = arith.constant 0 : i32
    return %c0_i32, %c0_i32_0 : i32, i32
  }
  func.func @transform_3(%arg0: i32) -> (i32, i32) {
    %c0_i32 = arith.constant 0 : i32
    %c0_i32_0 = arith.constant 0 : i32
    %c0_i32_1 = arith.constant 0 : i32
    return %c0_i32, %c0_i32_0 : i32, i32
  }
  func.func @transform_4(%arg0: i32) -> (i32, i32) {
    %c0_i32 = arith.constant 0 : i32
    %c0_i32_0 = arith.constant 0 : i32
    %c0_i32_1 = arith.constant 0 : i32
    return %c0_i32, %c0_i32_0 : i32, i32
  }
  func.func @transform_5(%arg0: i32) -> (i32, i32) {
    %c0_i32 = arith.constant 0 : i32
    %c0_i32_0 = arith.constant 0 : i32
    return %arg0, %c0_i32 : i32, i32
  }
}

</mosaic_0001>

<bundles_post_ra>
// kernel: tpu_custom_call.1
= control target key start
LH: loop header
LB: loop body
LE: loop exit
PB: predicated region body
PF: predicated region fallthrough
CT: control target
= control target key end

     0   :  { %s534_s0 = inlined_call_operand.vmem [shape: f32[16,128], index: 0, kind: input, shape index: {}]   ;;  %s535_s1 = inlined_call_operand.vmem [shape: f32[128,64], index: 1, kind: input, shape index: {}]   ;;  %s536_s2 = inlined_call_operand.vmem [shape: f32[1,64], index: 2, kind: input, shape index: {}]   ;;  %s537_s3 = inlined_call_operand.vmem [shape: f32[64,128], index: 3, kind: input, shape index: {}]   ;;  %s538_s4 = inlined_call_operand.vmem [shape: f32[1,128], index: 4, kind: input, shape index: {}]   ;;  %s539_s5 = inlined_call_operand.hbm [shape: f32[16,128], index: 5, kind: output, shape index: {}]  }
   0x1   :  { %v23_v0 = vld [vmem:[%s535_s1] sm:$0xff]  ;;  %v24_v1 = vld [vmem:[%s535_s1 + $0x8] sm:$0xff]  ;;  %v25_v2 = vld [vmem:[%s535_s1 + $0x10] sm:$0xff] }
   0x2   :  { %v326_v3 = vpack.c.bf16 %v24_v1, %v23_v0  ;;  %v26_v4 = vld [vmem:[%s535_s1 + $0x18] sm:$0xff]  ;;  %v27_v6 = vld [vmem:[%s535_s1 + $0x20] sm:$0xff]  ;;  %v28_v7 = vld [vmem:[%s535_s1 + $0x28] sm:$0xff] }
   0x3   :  { %v330_v5 = vpack.c.bf16 %v26_v4, %v25_v2  ;;  %v334_v8 = vpack.c.bf16 %v28_v7, %v27_v6  ;;  %v29_v9 = vld [vmem:[%s535_s1 + $0x30] sm:$0xff]  ;;  %v30_v10 = vld [vmem:[%s535_s1 + $0x38] sm:$0xff]  ;;  %v461_v11 = vld [vmem:[%s534_s0] sm:$0xff] }
   0x4   :  { %327 = vmatprep.subr.bf16.mxu0 %v326_v3  ;;  %304 = vmatprep.mubr.f32.mxu0 %v461_v11  ;;  %v123_v12 = vld [vmem:[%s537_s3] sm:$0xff]  ;;  %v124_v13 = vld [vmem:[%s537_s3 + $0x8] sm:$0xff]  ;;  %v125_v14 = vld [vmem:[%s537_s3 + $0x10] sm:$0xff] }
   0x5   :  { %329 = vmatpush3.bf16.msra.mxu0 %v326_v3  ;;  %v358_v15 = vpack.c.bf16 %v124_v13, %v123_v12  ;;  %v126_v16 = vld [vmem:[%s537_s3 + $0x18] sm:$0xff]  ;;  %v127_v18 = vld [vmem:[%s537_s3 + $0x20] sm:$0xff]  ;;  %v128_v19 = vld [vmem:[%s537_s3 + $0x28] sm:$0xff] }
   0x6   :  { %331 = vmatprep.subr.bf16.mxu0 %v330_v5  ;;  %v362_v17 = vpack.c.bf16 %v126_v16, %v125_v14 }
   0x9   :  { %333 = vmatpush3.bf16.msra.mxu0 %v330_v5 }
   0xa   :  { %10 = vsyncpa [#allocation3], 0  ;;  %335 = vmatprep.subr.bf16.mxu0 %v334_v8  ;;  %v338_v20 = vpack.c.bf16 %v30_v10, %v29_v9  ;;  %359 = vmatprep.subr.bf16.mxu1 %v358_v15  ;;  %v31_v21 = vld [vmem:[%s535_s1 + $0x40] sm:$0xff]  ;;  %v32_v22 = vld [vmem:[%s535_s1 + $0x48] sm:$0xff]  ;;  %v366_v23 = vpack.c.bf16 %v128_v19, %v127_v18  ;;  %vm138_vm0 = vcmask 523264  }
   0xb   :  { %361 = vmatpush3.bf16.msra.mxu1 %v358_v15  ;;  %v342_v24 = vpack.c.bf16 %v32_v22, %v31_v21  ;;  %v33_v25 = vld [vmem:[%s535_s1 + $0x50] sm:$0xff]  ;;  %v34_v26 = vld [vmem:[%s535_s1 + $0x58] sm:$0xff]  ;;  %v35_v28 = vld [vmem:[%s535_s1 + $0x60] sm:$0xff] }
   0xc   :  { %363 = vmatprep.subr.bf16.mxu1 %v362_v17  ;;  %v346_v27 = vpack.c.bf16 %v34_v26, %v33_v25  ;;  %v36_v29 = vld [vmem:[%s535_s1 + $0x68] sm:$0xff]  ;;  %v37_v31 = vld [vmem:[%s535_s1 + $0x70] sm:$0xff]  ;;  %v38_v32 = vld [vmem:[%s535_s1 + $0x78] sm:$0xff] }
   0xd   :  { %337 = vmatpush3.bf16.msra.mxu0 %v334_v8  ;;  %v350_v30 = vpack.c.bf16 %v36_v29, %v35_v28  ;;  %v354_v33 = vpack.c.bf16 %v38_v32, %v37_v31  ;;  %v22_v34 = vld [vmem:[%s534_s0 + $0x8] sm:$0xff]  ;;  %v129_v35 = vld [vmem:[%s537_s3 + $0x30] sm:$0xff]  ;;  %v130_v36 = vld [vmem:[%s537_s3 + $0x38] sm:$0xff]  ;;  %s401_s3 = smov [#allocation2]  }
   0xe   :  { %339 = vmatprep.subr.bf16.mxu0 %v338_v20  ;;  %v370_v37 = vpack.c.bf16 %v130_v36, %v129_v35  ;;  %v240_v38 = vld [vmem:[%s536_s2] ss:$0 sm:$0xff]  ;;  %s229_s22 = sshll.u32 %s401_s3, 4  ;;  %s230_s22 = int_to_ptr.vmem [resolvable:$true] %s229_s22 }
   0xf   :  { %365 = vmatpush3.bf16.msra.mxu1 %v362_v17  ;;  %v241_v45 = vld [vmem:[%s538_s4] ss:$0 sm:$0xff]  ;;  %s377_s2 = scalar_lea.vmem %s230_s22, 256  ;;  %p382_p1 = scmp.lt.s32.totalorder %s230_s22, %s230_s22 }
  0x10   :  { %367 = vmatprep.subr.bf16.mxu1 %v366_v23  ;;  %p378_p0 = scmp.ne.s32.totalorder %s230_s22, %s377_s2  ;;  %p383_p2 = scmp.lt.s32.totalorder %s377_s2, %s377_s2 }
  0x11   :  { %341 = vmatpush3.bf16.msra.mxu0 %v338_v20 }
  0x12   :  { %343 = vmatprep.subr.bf16.mxu0 %v342_v24  ;;  %p384_p3 = por %p383_p2, %p382_p1 }
  0x13   :  { %369 = vmatpush3.bf16.msra.mxu1 %v366_v23 }
  0x14   :  { %371 = vmatprep.subr.bf16.mxu1 %v370_v37  ;;  %p385_p4 = pnand %p384_p3, %p378_p0 }
  0x15   :  { %345 = vmatpush3.bf16.msra.mxu0 %v342_v24 }
  0x16   :  { %347 = vmatprep.subr.bf16.mxu0 %v346_v27 }
  0x17   :  { %373 = vmatpush3.bf16.msra.mxu1 %v370_v37 }
  0x19   :  { %349 = vmatpush3.bf16.msra.mxu0 %v346_v27 }
  0x1a   :  { %351 = vmatprep.subr.bf16.mxu0 %v350_v30 }
  0x1d   :  { %353 = vmatpush3.bf16.msra.mxu0 %v350_v30 }
  0x1e   :  { %355 = vmatprep.subr.bf16.mxu0 %v354_v33 }
  0x21   :  { %357 = vmatpush3.bf16.msra.mxu0 %v354_v33 }
  0x24   :  { %305 = vmatmul.mubr.f32.vlgmr.msra.gmra.mrb[0].mxu0 %v22_v34 }
  0xf7   :  { %v306_v39 = vpop.f32.mrb[0].mxu0 }
  0xf8   :  { %v118_v40 = vadd.f32 %v306_v39, %v240_v38  ;;  %v112_v41 = vpop.f32.mrb[1].mxu0 }
  0xf9   :  { %v113_v42 = vadd.f32 %v240_v38, %v112_v41 }
  0xfa   :  { %v122_v44 = vmax.f32 %v118_v40, 0.0 }
  0xfb   :  { %v121_v43 = vmax.f32 %v113_v42, 0.0 }
  0xfd   :  { %323 = vmatprep.mubr.msk.f32.mxu1 %vm138_vm0, %v121_v43 }
  0xfe   :  { %324 = vmatmul.mubr.msk.f32.vlgmr.msra.gmra.mrb[0].mxu1 %vm138_vm0, %v122_v44 }
 0x1d1   :  { %v325_v46 = vpop.f32.mrb[0].mxu1 }
 0x1d2   :  { %v217_v47 = vadd.f32 %v325_v46, %v241_v45  ;;  %v211_v48 = vpop.f32.mrb[1].mxu1 }
 0x1d3   :  { %v212_v49 = vadd.f32 %v241_v45, %v211_v48 }
 0x1d4   :  { %v221_v50 = vadd.f32 %v217_v47, %v22_v34 }
 0x1d5   :  { %v220_v51 = vadd.f32 %v212_v49, %v461_v11 }
 0x1d6   :  { %223 = vst [vmem:[#allocation2 + $0x8] sm:$0xff] %v221_v50 }
 0x1d7   :  { %222 = vst [vmem:[#allocation2] sm:$0xff] %v220_v51 }
 0x1d8   :  { %388 = shalt.err (!%p385_p4)
}
 0x1d9   :  { %s389_s24 = scalar_lea.hbm %s539_s5, 256 }
 0x1da   :  { %p390_p5 = scmp.ne.s32.totalorder %s539_s5, %s389_s24  ;;  %p393_p6 = scmp.lt.u32.totalorder %s389_s24, %s539_s5 }
 0x1dc   :  { %p395_p7 = pnand %p393_p6, %p390_p5 }
 0x1de   :  { %398 = shalt.err (!%p395_p7)
}
 0x1df   :  { %s402_s29 = smov 128   ;;  %s403_s30 = smov 8  }
 0x1e0   :  { %235 = dma.vmem_to_hbm [thread:$0]  %s230_s22, 256, %s539_s5, [#allocation3], %s402_s29, %s402_s29, %s403_s30  }
 0x1e1   :  { %399 = dma.done.wait [#allocation3], 256  }
 0x1e2   :  { %400 = vsyncadd [#allocation3], 4294967040 }
 0x1e3   :  { %239 = vsyncpa [#allocation3], 1 }

</bundles_post_ra>
